<compile_context>
chip_gen: v7x
topology: tpu7x:2x2x1
jax: 0.10.0
libtpu: 0.0.40
codegen_flags: <defaults>
</compile_context>

<pallas_src>
import functools

import jax
import jax.numpy as jnp
from jax.experimental import pallas as pl
from jax.experimental.pallas import tpu as pltpu

LANE = 128


def _round_up(x, m):
    return (x + m - 1) // m * m


def _pad2(a, rows, cols):
    return jnp.pad(a, ((0, rows - a.shape[0]), (0, cols - a.shape[1])))


def _vmem_budget_bytes():
    """Per-generation VMEM capacity minus ~20% headroom for compiler scratch."""
    cap = 64 * 1024 * 1024  # conservative default = v7x per-TensorCore VMEM
    try:
        info = pltpu.get_tpu_info()
        cap = int(getattr(info, "vmem_capacity_bytes", cap))
    except Exception:
        pass
    return int(cap * 0.8)


def _propagate_kernel(adj_ref, hw_ref, b_ref, o_ref, *, apply_relu):
    """One grid step: out[row_tile] = A_hat[row_tile, :] @ HW + b (+ ReLU)."""
    agg = jnp.dot(adj_ref[...], hw_ref[...],
                  preferred_element_type=jnp.float32)     # bf16 MXU, f32 acc
    out = agg + b_ref[...]                                # bias broadcast in f32
    if apply_relu:
        out = jnp.maximum(out, 0.0)
    o_ref[...] = out.astype(o_ref.dtype)                  # lane-dense store


def _propagate(adj_p, hw_p, b_p, *, apply_relu, out_dtype, tm, vmem_limit):
    """A_hat @ HW + b (+ReLU), row-tiled over the adjacency."""
    n_pad = adj_p.shape[0]
    c_pad = hw_p.shape[1]
    grid = (n_pad // tm,)

    out_bytes = 2 if out_dtype == jnp.bfloat16 else 4
    flops = 2 * n_pad * n_pad * c_pad
    bytes_accessed = (n_pad * n_pad * 2          # adjacency row tiles (bf16)
                      + n_pad * c_pad * 2        # resident HW (bf16)
                      + c_pad * 4                # bias
                      + n_pad * c_pad * out_bytes)

    return pl.pallas_call(
        functools.partial(_propagate_kernel, apply_relu=apply_relu),
        out_shape=jax.ShapeDtypeStruct((n_pad, c_pad), out_dtype),
        grid_spec=pltpu.PrefetchScalarGridSpec(
            num_scalar_prefetch=0,
            grid=grid,
            in_specs=[
                pl.BlockSpec((tm, n_pad), lambda i: (i, 0)),     # adj row tile (pipelined)
                pl.BlockSpec((n_pad, c_pad), lambda i: (0, 0)),  # HW kept resident
                pl.BlockSpec((1, c_pad), lambda i: (0, 0)),      # bias kept resident
            ],
            out_specs=pl.BlockSpec((tm, c_pad), lambda i: (i, 0)),
        ),
        compiler_params=pltpu.CompilerParams(
            dimension_semantics=("parallel",),   # v7x: shard row tiles over 2 TCs
            vmem_limit_bytes=vmem_limit),
        cost_estimate=pl.CostEstimate(
            flops=flops, transcendentals=0, bytes_accessed=bytes_accessed),
    )(adj_p, hw_p, b_p)


def _project_bf16(h, w):
    """Tiny O(N*C^2) feature projection: plain XLA, bf16 MXU, f32 accumulate."""
    return jnp.dot(h.astype(jnp.bfloat16), w.astype(jnp.bfloat16),
                   preferred_element_type=jnp.float32).astype(jnp.bfloat16)


def build_norm_adj(edge_index, num_nodes):
    """Dense D^{-1/2} (A + I) D^{-1/2}, matching PyG GCNConv gcn_norm.

    edge_index[0] = source (row), edge_index[1] = target (col);
    messages flow source -> target, so A_msg[target, source] = 1.
    """
    src = edge_index[0]
    dst = edge_index[1]
    loop = jnp.arange(num_nodes, dtype=src.dtype)
    src = jnp.concatenate([src, loop])
    dst = jnp.concatenate([dst, loop])
    a = jnp.zeros((num_nodes, num_nodes), jnp.float32).at[dst, src].add(1.0)
    deg = a.sum(axis=1)                                  # in-degree (incl. self-loop)
    dinv = jnp.where(deg > 0, jax.lax.rsqrt(deg), 0.0)
    return dinv[:, None] * a * dinv[None, :]


def gcn_forward(x, edge_index, params):
    n, _ = x.shape
    hid_dim = params["w1"].shape[1]
    out_dim = params["w3"].shape[1]

    hid_pad = _round_up(hid_dim, LANE)
    out_pad = _round_up(out_dim, LANE)
    c_max = max(hid_pad, out_pad)

    # Row padding + row-tile size: n_pad is within 127 rows of n, the tile is
    # the largest of {512, 256, 128} dividing n_pad, shrunk further if needed
    # to fit the per-generation VMEM budget.
    n_pad = _round_up(n, LANE)
    tm = next(t for t in (512, 256, 128) if n_pad % t == 0)

    budget = _vmem_budget_bytes()

    def vmem_need(t):
        return (2 * t * n_pad * 2        # adj row tile, double-buffered, bf16
                + 2 * n_pad * c_max * 2  # resident HW (bf16), 2 buffers
                + 2 * c_max * 4          # bias
                + 2 * t * c_max * 4      # output tile, double-buffered (f32 worst case)
                + 4 * t * c_max * 4)     # in-kernel f32 temporaries headroom

    while vmem_need(tm) > budget and tm > 8:
        tm //= 2
    if vmem_need(tm) > budget:
        # TODO(synk): block-sparse adjacency path for graphs at this scale.
        raise ValueError("adjacency row tile does not fit the VMEM budget")

    # Normalized dense adjacency (f32 build, bf16 MXU operand). Zero padding of
    # rows/cols cannot leak into real outputs: padded adjacency columns are 0.
    adj = build_norm_adj(edge_index, n)
    adj_p = _pad2(adj, n_pad, n_pad).astype(jnp.bfloat16)

    w2_p = _pad2(params["w2"], hid_pad, hid_pad).astype(jnp.bfloat16)
    w3_p = _pad2(params["w3"], hid_pad, out_pad).astype(jnp.bfloat16)
    b1_p = _pad2(params["b1"], 1, hid_pad)
    b2_p = _pad2(params["b2"], 1, hid_pad)
    b3_p = _pad2(params["b3"], 1, out_pad)

    # ----- layer 1: relu(A_hat @ (X @ W1) + b1) -----
    hw = _pad2(_project_bf16(x, params["w1"]), n_pad, hid_pad)  # in_dim never padded to 128
    h = _propagate(adj_p, hw, b1_p, apply_relu=True,
                   out_dtype=jnp.bfloat16, tm=tm, vmem_limit=budget)
    # dropout: identity (inference mode, training=False)

    # ----- layer 2: relu(A_hat @ (H @ W2) + b2) -----
    hw = _project_bf16(h, w2_p)
    h = _propagate(adj_p, hw, b2_p, apply_relu=True,
                   out_dtype=jnp.bfloat16, tm=tm, vmem_limit=budget)
    # dropout: identity (inference mode, training=False)

    # ----- layer 3: A_hat @ (H @ W3) + b3 -----
    hw = _project_bf16(h, w3_p)
    out_p = _propagate(adj_p, hw, b3_p, apply_relu=False,
                       out_dtype=jnp.float32, tm=tm, vmem_limit=budget)

    # Strip padding; matches `return x.view(-1)`.
    return out_p[:n, :out_dim].reshape(-1)


def gcn_reference(x, edge_index, params):
    """Pure-JAX f32 reference (same math, no bf16)."""
    adj = build_norm_adj(edge_index, x.shape[0])
    h = jnp.maximum(adj @ (x @ params["w1"]) + params["b1"], 0.0)
    h = jnp.maximum(adj @ (h @ params["w2"]) + params["b2"], 0.0)
    h = adj @ (h @ params["w3"]) + params["b3"]
    return h.reshape(-1)


def init_params(key, input_dim, hidden_dim, output_dim):
    k1, k2, k3 = jax.random.split(key, 3)

    def glorot(k, fan_in, fan_out):
        lim = jnp.sqrt(6.0 / (fan_in + fan_out))
        return jax.random.uniform(k, (fan_in, fan_out), jnp.float32, -lim, lim)

    return {
        "w1": glorot(k1, input_dim, hidden_dim),
        "b1": jnp.zeros((1, hidden_dim), jnp.float32),
        "w2": glorot(k2, hidden_dim, hidden_dim),
        "b2": jnp.zeros((1, hidden_dim), jnp.float32),
        "w3": glorot(k3, hidden_dim, output_dim),
        "b3": jnp.zeros((1, output_dim), jnp.float32),
    }


if __name__ == "__main__":
    num_nodes = 16
    num_edges = 40
    input_dim, hidden_dim, output_dim = 8, 32, 4

    key = jax.random.PRNGKey(0)
    kx, ke, kp = jax.random.split(key, 3)

    x = jax.random.normal(kx, (num_nodes, input_dim), jnp.float32)
    edge_index = jax.random.randint(ke, (2, num_edges), 0, num_nodes, jnp.int32)
    params = init_params(kp, input_dim, hidden_dim, output_dim)

    out = jax.jit(gcn_forward)(x, edge_index, params)
    jax.block_until_ready(out)

    assert out.shape == (num_nodes * output_dim,)
    assert jnp.all(jnp.isfinite(out))

    # Validate against the f32 reference with a loosened tolerance (adjacency,
    # weights and intermediate activations are bf16 with f32 accumulation).
    ref = gcn_reference(x, edge_index, params)
    rel_err = jnp.max(jnp.abs(out - ref)) / (jnp.max(jnp.abs(ref)) + 1e-6)
    assert rel_err < 5e-2, f"relative error too large: {rel_err}"

    print("KERNEL_OK")
</pallas_src>

<mosaic_0001>
module attributes {stable_mosaic.version = 11 : i64} {
  func.func @_propagate_kernel(%arg0: i32, %arg1: memref<128x128xbf16, #tpu.memory_space<vmem>>, %arg2: memref<128x128xbf16, #tpu.memory_space<vmem>>, %arg3: memref<1x128xf32, #tpu.memory_space<vmem>>, %arg4: memref<128x128xf32, #tpu.memory_space<vmem>>) attributes {dimension_semantics = [#tpu.dimension_semantics<parallel>], iteration_bounds = array<i64: 1>, scalar_prefetch = 0 : i64, scratch_operands = 0 : i64, tpu.core_type = #tpu.core_type<tc>, window_params = [{transform_indices = @transform_0, window_bounds = array<i64: 128, 128>}, {pipeline_mode = #tpu.pipeline_mode<synchronous>, transform_indices = @transform_1, window_bounds = array<i64: 128, 128>}, {pipeline_mode = #tpu.pipeline_mode<synchronous>, transform_indices = @transform_2, window_bounds = array<i64: 1, 128>}, {transform_indices = @transform_3, window_bounds = array<i64: 128, 128>}]} {
    %c0 = arith.constant 0 : index
    %c0_0 = arith.constant 0 : index
    %0 = vector.load %arg1[%c0, %c0_0] : memref<128x128xbf16, #tpu.memory_space<vmem>>, vector<128x128xbf16>
    %c0_1 = arith.constant 0 : index
    %c0_2 = arith.constant 0 : index
    %1 = vector.load %arg2[%c0_1, %c0_2] : memref<128x128xbf16, #tpu.memory_space<vmem>>, vector<128x128xbf16>
    %cst = arith.constant dense<0.000000e+00> : vector<128x128xf32>
    %2 = tpu.matmul %0, %1, %cst {dimension_numbers = #tpu.dot_dimension_numbers<[1], [0], [0], [1], [0, 0, 1, 1], [], []>} : vector<128x128xbf16>, vector<128x128xbf16>, vector<128x128xf32> -> vector<128x128xf32>
    %c0_3 = arith.constant 0 : index
    %c0_4 = arith.constant 0 : index
    %3 = vector.load %arg3[%c0_3, %c0_4] : memref<1x128xf32, #tpu.memory_space<vmem>>, vector<1x128xf32>
    %4 = vector.broadcast %3 : vector<1x128xf32> to vector<128x128xf32>
    %5 = arith.addf %2, %4 : vector<128x128xf32>
    %c0_5 = arith.constant 0 : index
    %c0_6 = arith.constant 0 : index
    %6 = vector.load %arg4[%c0_5, %c0_6] : memref<128x128xf32, #tpu.memory_space<vmem>>, vector<128x128xf32>
    tpu.vector_store %arg4[%c0_5, %c0_6], %5 {strides = array<i32>} : memref<128x128xf32, #tpu.memory_space<vmem>>, vector<128x128xf32>,
    return
  }
  func.func @transform_0(%arg0: i32) -> (i32, i32) {
    %c0_i32 = arith.constant 0 : i32
    %c0_i32_0 = arith.constant 0 : i32
    return %arg0, %c0_i32 : i32, i32
  }
  func.func @transform_1(%arg0: i32) -> (i32, i32) {
    %c0_i32 = arith.constant 0 : i32
    %c0_i32_0 = arith.constant 0 : i32
    %c0_i32_1 = arith.constant 0 : i32
    return %c0_i32, %c0_i32_0 : i32, i32
  }
  func.func @transform_2(%arg0: i32) -> (i32, i32) {
    %c0_i32 = arith.constant 0 : i32
    %c0_i32_0 = arith.constant 0 : i32
    %c0_i32_1 = arith.constant 0 : i32
    return %c0_i32, %c0_i32_0 : i32, i32
  }
  func.func @transform_3(%arg0: i32) -> (i32, i32) {
    %c0_i32 = arith.constant 0 : i32
    %c0_i32_0 = arith.constant 0 : i32
    return %arg0, %c0_i32 : i32, i32
  }
}

module attributes {stable_mosaic.version = 11 : i64} {
  func.func @_propagate_kernel(%arg0: i32, %arg1: memref<128x128xbf16, #tpu.memory_space<vmem>>, %arg2: memref<128x128xbf16, #tpu.memory_space<vmem>>, %arg3: memref<1x128xf32, #tpu.memory_space<vmem>>, %arg4: memref<128x128xbf16, #tpu.memory_space<vmem>>) attributes {dimension_semantics = [#tpu.dimension_semantics<parallel>], iteration_bounds = array<i64: 1>, scalar_prefetch = 0 : i64, scratch_operands = 0 : i64, tpu.core_type = #tpu.core_type<tc>, window_params = [{transform_indices = @transform_0, window_bounds = array<i64: 128, 128>}, {pipeline_mode = #tpu.pipeline_mode<synchronous>, transform_indices = @transform_1, window_bounds = array<i64: 128, 128>}, {pipeline_mode = #tpu.pipeline_mode<synchronous>, transform_indices = @transform_2, window_bounds = array<i64: 1, 128>}, {transform_indices = @transform_3, window_bounds = array<i64: 128, 128>}]} {
    %c0 = arith.constant 0 : index
    %c0_0 = arith.constant 0 : index
    %0 = vector.load %arg1[%c0, %c0_0] : memref<128x128xbf16, #tpu.memory_space<vmem>>, vector<128x128xbf16>
    %c0_1 = arith.constant 0 : index
    %c0_2 = arith.constant 0 : index
    %1 = vector.load %arg2[%c0_1, %c0_2] : memref<128x128xbf16, #tpu.memory_space<vmem>>, vector<128x128xbf16>
    %cst = arith.constant dense<0.000000e+00> : vector<128x128xf32>
    %2 = tpu.matmul %0, %1, %cst {dimension_numbers = #tpu.dot_dimension_numbers<[1], [0], [0], [1], [0, 0, 1, 1], [], []>} : vector<128x128xbf16>, vector<128x128xbf16>, vector<128x128xf32> -> vector<128x128xf32>
    %c0_3 = arith.constant 0 : index
    %c0_4 = arith.constant 0 : index
    %3 = vector.load %arg3[%c0_3, %c0_4] : memref<1x128xf32, #tpu.memory_space<vmem>>, vector<1x128xf32>
    %4 = vector.broadcast %3 : vector<1x128xf32> to vector<128x128xf32>
    %5 = arith.addf %2, %4 : vector<128x128xf32>
    %cst_5 = arith.constant 0.000000e+00 : f32
    %6 = vector.broadcast %cst_5 : f32 to vector<128x128xf32>
    %7 = arith.maximumf %5, %6 : vector<128x128xf32>
    %8 = arith.truncf %7 : vector<128x128xf32> to vector<128x128xbf16>
    %c0_6 = arith.constant 0 : index
    %c0_7 = arith.constant 0 : index
    %9 = vector.load %arg4[%c0_6, %c0_7] : memref<128x128xbf16, #tpu.memory_space<vmem>>, vector<128x128xbf16>
    tpu.vector_store %arg4[%c0_6, %c0_7], %8 {strides = array<i32>} : memref<128x128xbf16, #tpu.memory_space<vmem>>, vector<128x128xbf16>,
    return
  }
  func.func @transform_0(%arg0: i32) -> (i32, i32) {
    %c0_i32 = arith.constant 0 : i32
    %c0_i32_0 = arith.constant 0 : i32
    return %arg0, %c0_i32 : i32, i32
  }
  func.func @transform_1(%arg0: i32) -> (i32, i32) {
    %c0_i32 = arith.constant 0 : i32
    %c0_i32_0 = arith.constant 0 : i32
    %c0_i32_1 = arith.constant 0 : i32
    return %c0_i32, %c0_i32_0 : i32, i32
  }
  func.func @transform_2(%arg0: i32) -> (i32, i32) {
    %c0_i32 = arith.constant 0 : i32
    %c0_i32_0 = arith.constant 0 : i32
    %c0_i32_1 = arith.constant 0 : i32
    return %c0_i32, %c0_i32_0 : i32, i32
  }
  func.func @transform_3(%arg0: i32) -> (i32, i32) {
    %c0_i32 = arith.constant 0 : i32
    %c0_i32_0 = arith.constant 0 : i32
    return %arg0, %c0_i32 : i32, i32
  }
}

</mosaic_0001>

<bundles_post_ra>
// kernel: gcn_forward.3
= control target key start
LH: loop header
LB: loop body
LE: loop exit
PB: predicated region body
PF: predicated region fallthrough
CT: control target
= control target key end

     0   :  { %s475_s1 = inlined_call_operand.vmem [shape: bf16[128,128], index: 1, kind: input, shape index: {}]   ;;  %s476_s0 = inlined_call_operand.vmem [shape: bf16[128,128], index: 0, kind: input, shape index: {}]   ;;  %s477_s2 = inlined_call_operand.vmem [shape: f32[1,128], index: 2, kind: input, shape index: {}]   ;;  %s478_s3 = inlined_call_operand.vmem [shape: bf16[128,128], index: 3, kind: output, shape index: {}]  }
   0x1   :  { %v364_v0 = vld [vmem:[%s475_s1] sm:$0xff]   ;;  %v365_v1 = vld [vmem:[%s475_s1 + $0x8] sm:$0xff]   ;;  %v366_v2 = vld [vmem:[%s475_s1 + $0x10] sm:$0xff]  }
   0x2   :  { %316 = vmatprep.subr.bf16.mxu0 %v364_v0  ;;  %348 = vmatprep.subr.bf16.mxu1 %v364_v0  ;;  %v367_v3 = vld [vmem:[%s475_s1 + $0x18] sm:$0xff]   ;;  %v372_v4 = vld [vmem:[%s476_s0] sm:$0xff]   ;;  %v369_v7 = vld [vmem:[%s475_s1 + $0x28] sm:$0xff]  }
   0x3   :  { %317 = vmatpush3.bf16.msra.mxu0 %v364_v0  ;;  %356 = vmatpush3.bf16.msra.mxu1 %v364_v0  ;;  %v373_v5 = vld [vmem:[%s476_s0 + $0x20] sm:$0xff]   ;;  %v370_v8 = vld [vmem:[%s475_s1 + $0x30] sm:$0xff]   ;;  %v371_v9 = vld [vmem:[%s475_s1 + $0x38] sm:$0xff]  }
   0x4   :  { %318 = vmatprep.subr.bf16.mxu0 %v365_v1  ;;  %349 = vmatprep.subr.bf16.mxu1 %v365_v1  ;;  %v368_v6 = vld [vmem:[%s475_s1 + $0x20] sm:$0xff]   ;;  %v374_v10 = vld [vmem:[%s476_s0 + $0x8] sm:$0xff]   ;;  %v376_v12 = vld [vmem:[%s476_s0 + $0x10] sm:$0xff]  }
   0x5   :  { %332 = vmatprep.mubr.bf16.mxu0 %v372_v4  ;;  %340 = vmatprep.mubr.bf16.mxu1 %v373_v5  ;;  %v375_v11 = vld [vmem:[%s476_s0 + $0x28] sm:$0xff]   ;;  %v377_v13 = vld [vmem:[%s476_s0 + $0x30] sm:$0xff]   ;;  %v378_v14 = vld [vmem:[%s476_s0 + $0x18] sm:$0xff]  }
   0x6   :  { %v379_v15 = vld [vmem:[%s476_s0 + $0x38] sm:$0xff]   ;;  %v283_v16 = vld [vmem:[%s477_s2] ss:$0 sm:$0xff] }
   0x7   :  { %319 = vmatpush3.bf16.msra.mxu0 %v365_v1  ;;  %357 = vmatpush3.bf16.msra.mxu1 %v365_v1 }
   0x8   :  { %320 = vmatprep.subr.bf16.mxu0 %v366_v2  ;;  %350 = vmatprep.subr.bf16.mxu1 %v366_v2 }
   0xb   :  { %321 = vmatpush3.bf16.msra.mxu0 %v366_v2  ;;  %358 = vmatpush3.bf16.msra.mxu1 %v366_v2 }
   0xc   :  { %322 = vmatprep.subr.bf16.mxu0 %v367_v3  ;;  %351 = vmatprep.subr.bf16.mxu1 %v367_v3 }
   0xf   :  { %323 = vmatpush3.bf16.msra.mxu0 %v367_v3  ;;  %359 = vmatpush3.bf16.msra.mxu1 %v367_v3 }
  0x10   :  { %324 = vmatprep.subr.bf16.mxu0 %v368_v6  ;;  %352 = vmatprep.subr.bf16.mxu1 %v368_v6 }
  0x13   :  { %325 = vmatpush3.bf16.msra.mxu0 %v368_v6  ;;  %360 = vmatpush3.bf16.msra.mxu1 %v368_v6 }
  0x14   :  { %326 = vmatprep.subr.bf16.mxu0 %v369_v7  ;;  %353 = vmatprep.subr.bf16.mxu1 %v369_v7 }
  0x17   :  { %327 = vmatpush3.bf16.msra.mxu0 %v369_v7  ;;  %361 = vmatpush3.bf16.msra.mxu1 %v369_v7 }
  0x18   :  { %328 = vmatprep.subr.bf16.mxu0 %v370_v8  ;;  %354 = vmatprep.subr.bf16.mxu1 %v370_v8 }
  0x1b   :  { %329 = vmatpush3.bf16.msra.mxu0 %v370_v8  ;;  %362 = vmatpush3.bf16.msra.mxu1 %v370_v8 }
  0x1c   :  { %330 = vmatprep.subr.bf16.mxu0 %v371_v9  ;;  %355 = vmatprep.subr.bf16.mxu1 %v371_v9 }
  0x1f   :  { %331 = vmatpush3.bf16.msra.mxu0 %v371_v9  ;;  %363 = vmatpush3.bf16.msra.mxu1 %v371_v9 }
  0x22   :  { %333 = vmatmul.mubr.bf16.vlgmr.msra.gmra.mrb[0].mxu0 %v374_v10  ;;  %341 = vmatmul.mubr.bf16.vlgmr.msra.gmra.mrb[0].mxu1 %v375_v11 }
  0x23   :  { %336 = vmatprep.mubr.bf16.mxu0 %v376_v12  ;;  %344 = vmatprep.mubr.bf16.mxu1 %v377_v13 }
  0x2a   :  { %337 = vmatmul.mubr.bf16.gmra.mrb[4].mxu0 %v378_v14  ;;  %345 = vmatmul.mubr.bf16.gmra.mrb[4].mxu1 %v379_v15 }
  0xf5   :  { %v334_v17 = vpop.f32.mrb[0].mxu0  ;;  %v342_v18 = vpop.f32.mrb[0].mxu1 }
  0xf6   :  { %v193_v19 = vadd.f32 %v334_v17, %v283_v16  ;;  %v225_v20 = vadd.f32 %v342_v18, %v283_v16  ;;  %v184_v21 = vpop.f32.mrb[1].mxu0  ;;  %v216_v22 = vpop.f32.mrb[1].mxu1 }
  0xf7   :  { %v185_v23 = vadd.f32 %v283_v16, %v184_v21  ;;  %v217_v24 = vadd.f32 %v283_v16, %v216_v22  ;;  %v335_v25 = vpop.f32.mrb[2].mxu0  ;;  %v343_v26 = vpop.f32.mrb[2].mxu1 }
  0xf8   :  { %v196_v27 = vadd.f32 %v335_v25, %v283_v16  ;;  %v228_v28 = vadd.f32 %v343_v26, %v283_v16  ;;  %v187_v29 = vpop.f32.mrb[3].mxu0  ;;  %v219_v30 = vpop.f32.mrb[3].mxu1  ;;  %v249_v33 = vmax.f32 %v193_v19, 0.0  ;;  %v257_v34 = vmax.f32 %v225_v20, 0.0 }
  0xf9   :  { %v188_v31 = vadd.f32 %v283_v16, %v187_v29  ;;  %v220_v32 = vadd.f32 %v283_v16, %v219_v30  ;;  %v247_v37 = vmax.f32 %v185_v23, 0.0  ;;  %v255_v38 = vmax.f32 %v217_v24, 0.0 }
  0xfa   :  { %v250_v35 = vmax.f32 %v196_v27, 0.0  ;;  %v258_v36 = vmax.f32 %v228_v28, 0.0 }
  0xfb   :  { %v248_v39 = vmax.f32 %v188_v31, 0.0  ;;  %v256_v40 = vmax.f32 %v220_v32, 0.0 }
  0xfc   :  { %v264_v41 = vpack.c.bf16 %v250_v35, %v249_v33  ;;  %v268_v42 = vpack.c.bf16 %v258_v36, %v257_v34 }
  0xfd   :  { %v263_v43 = vpack.c.bf16 %v248_v39, %v247_v37  ;;  %v267_v44 = vpack.c.bf16 %v256_v40, %v255_v38  ;;  %v338_v45 = vpop.f32.mrb[4].mxu0  ;;  %v346_v46 = vpop.f32.mrb[4].mxu1 }
  0xfe   :  { %272 = vst [vmem:[%s478_s3 + $0x8] sm:$0xff] %v264_v41  ;;  %276 = vst [vmem:[%s478_s3 + $0x28] sm:$0xff] %v268_v42  ;;  %v209_v47 = vadd.f32 %v338_v45, %v283_v16  ;;  %v241_v48 = vadd.f32 %v346_v46, %v283_v16  ;;  %v200_v49 = vpop.f32.mrb[5].mxu0  ;;  %v232_v50 = vpop.f32.mrb[5].mxu1 }
  0xff   :  { %271 = vst [vmem:[%s478_s3] sm:$0xff] %v263_v43  ;;  %275 = vst [vmem:[%s478_s3 + $0x20] sm:$0xff] %v267_v44  ;;  %v201_v51 = vadd.f32 %v283_v16, %v200_v49  ;;  %v233_v52 = vadd.f32 %v283_v16, %v232_v50  ;;  %v339_v53 = vpop.f32.mrb[6].mxu0  ;;  %v347_v54 = vpop.f32.mrb[6].mxu1 }
 0x100   :  { %v212_v55 = vadd.f32 %v339_v53, %v283_v16  ;;  %v244_v56 = vadd.f32 %v347_v54, %v283_v16  ;;  %v203_v57 = vpop.f32.mrb[7].mxu0  ;;  %v235_v58 = vpop.f32.mrb[7].mxu1  ;;  %v253_v61 = vmax.f32 %v209_v47, 0.0  ;;  %v261_v62 = vmax.f32 %v241_v48, 0.0 }
 0x101   :  { %v204_v59 = vadd.f32 %v283_v16, %v203_v57  ;;  %v236_v60 = vadd.f32 %v283_v16, %v235_v58  ;;  %v251_v1 = vmax.f32 %v201_v51, 0.0  ;;  %v259_v2 = vmax.f32 %v233_v52, 0.0 }
 0x102   :  { %v254_v63 = vmax.f32 %v212_v55, 0.0  ;;  %v262_v0 = vmax.f32 %v244_v56, 0.0 }
 0x103   :  { %v252_v3 = vmax.f32 %v204_v59, 0.0  ;;  %v260_v4 = vmax.f32 %v236_v60, 0.0 }
 0x104   :  { %v266_v5 = vpack.c.bf16 %v254_v63, %v253_v61  ;;  %v270_v6 = vpack.c.bf16 %v262_v0, %v261_v62 }
 0x105   :  { %v265_v7 = vpack.c.bf16 %v252_v3, %v251_v1  ;;  %v269_v8 = vpack.c.bf16 %v260_v4, %v259_v2 }
 0x106   :  { %274 = vst [vmem:[%s478_s3 + $0x18] sm:$0xff] %v266_v5  ;;  %278 = vst [vmem:[%s478_s3 + $0x38] sm:$0xff] %v270_v6 }
 0x107   :  { %273 = vst [vmem:[%s478_s3 + $0x10] sm:$0xff] %v265_v7  ;;  %277 = vst [vmem:[%s478_s3 + $0x30] sm:$0xff] %v269_v8 }

// kernel: gcn_forward.5
= control target key start
LH: loop header
LB: loop body
LE: loop exit
PB: predicated region body
PF: predicated region fallthrough
CT: control target
= control target key end

     0   :  { %s483_s1 = inlined_call_operand.vmem [shape: bf16[128,128], index: 1, kind: input, shape index: {}]   ;;  %s484_s0 = inlined_call_operand.vmem [shape: bf16[128,128], index: 0, kind: input, shape index: {}]   ;;  %s485_s2 = inlined_call_operand.vmem [shape: f32[1,128], index: 2, kind: input, shape index: {}]   ;;  %s486_s3 = inlined_call_operand.vmem [shape: f32[128,128], index: 3, kind: output, shape index: {}]  }
   0x1   :  { %v348_v0 = vld [vmem:[%s483_s1] sm:$0xff]   ;;  %v349_v1 = vld [vmem:[%s483_s1 + $0x8] sm:$0xff]   ;;  %v350_v2 = vld [vmem:[%s483_s1 + $0x10] sm:$0xff]  }
   0x2   :  { %300 = vmatprep.subr.bf16.mxu0 %v348_v0  ;;  %332 = vmatprep.subr.bf16.mxu1 %v348_v0  ;;  %v351_v3 = vld [vmem:[%s483_s1 + $0x18] sm:$0xff]   ;;  %v356_v4 = vld [vmem:[%s484_s0] sm:$0xff]   ;;  %v353_v7 = vld [vmem:[%s483_s1 + $0x28] sm:$0xff]  }
   0x3   :  { %301 = vmatpush3.bf16.msra.mxu0 %v348_v0  ;;  %340 = vmatpush3.bf16.msra.mxu1 %v348_v0  ;;  %v357_v5 = vld [vmem:[%s484_s0 + $0x20] sm:$0xff]   ;;  %v354_v8 = vld [vmem:[%s483_s1 + $0x30] sm:$0xff]   ;;  %v355_v9 = vld [vmem:[%s483_s1 + $0x38] sm:$0xff]  }
   0x4   :  { %302 = vmatprep.subr.bf16.mxu0 %v349_v1  ;;  %333 = vmatprep.subr.bf16.mxu1 %v349_v1  ;;  %v352_v6 = vld [vmem:[%s483_s1 + $0x20] sm:$0xff]   ;;  %v358_v10 = vld [vmem:[%s484_s0 + $0x8] sm:$0xff]   ;;  %v360_v12 = vld [vmem:[%s484_s0 + $0x10] sm:$0xff]  }
   0x5   :  { %316 = vmatprep.mubr.bf16.mxu0 %v356_v4  ;;  %324 = vmatprep.mubr.bf16.mxu1 %v357_v5  ;;  %v359_v11 = vld [vmem:[%s484_s0 + $0x28] sm:$0xff]   ;;  %v361_v13 = vld [vmem:[%s484_s0 + $0x30] sm:$0xff]   ;;  %v362_v14 = vld [vmem:[%s484_s0 + $0x18] sm:$0xff]  }
   0x6   :  { %v363_v15 = vld [vmem:[%s484_s0 + $0x38] sm:$0xff]   ;;  %v267_v16 = vld [vmem:[%s485_s2] ss:$0 sm:$0xff] }
   0x7   :  { %303 = vmatpush3.bf16.msra.mxu0 %v349_v1  ;;  %341 = vmatpush3.bf16.msra.mxu1 %v349_v1 }
   0x8   :  { %304 = vmatprep.subr.bf16.mxu0 %v350_v2  ;;  %334 = vmatprep.subr.bf16.mxu1 %v350_v2 }
   0xb   :  { %305 = vmatpush3.bf16.msra.mxu0 %v350_v2  ;;  %342 = vmatpush3.bf16.msra.mxu1 %v350_v2 }
   0xc   :  { %306 = vmatprep.subr.bf16.mxu0 %v351_v3  ;;  %335 = vmatprep.subr.bf16.mxu1 %v351_v3 }
   0xf   :  { %307 = vmatpush3.bf16.msra.mxu0 %v351_v3  ;;  %343 = vmatpush3.bf16.msra.mxu1 %v351_v3 }
  0x10   :  { %308 = vmatprep.subr.bf16.mxu0 %v352_v6  ;;  %336 = vmatprep.subr.bf16.mxu1 %v352_v6 }
  0x13   :  { %309 = vmatpush3.bf16.msra.mxu0 %v352_v6  ;;  %344 = vmatpush3.bf16.msra.mxu1 %v352_v6 }
  0x14   :  { %310 = vmatprep.subr.bf16.mxu0 %v353_v7  ;;  %337 = vmatprep.subr.bf16.mxu1 %v353_v7 }
  0x17   :  { %311 = vmatpush3.bf16.msra.mxu0 %v353_v7  ;;  %345 = vmatpush3.bf16.msra.mxu1 %v353_v7 }
  0x18   :  { %312 = vmatprep.subr.bf16.mxu0 %v354_v8  ;;  %338 = vmatprep.subr.bf16.mxu1 %v354_v8 }
  0x1b   :  { %313 = vmatpush3.bf16.msra.mxu0 %v354_v8  ;;  %346 = vmatpush3.bf16.msra.mxu1 %v354_v8 }
  0x1c   :  { %314 = vmatprep.subr.bf16.mxu0 %v355_v9  ;;  %339 = vmatprep.subr.bf16.mxu1 %v355_v9 }
  0x1f   :  { %315 = vmatpush3.bf16.msra.mxu0 %v355_v9  ;;  %347 = vmatpush3.bf16.msra.mxu1 %v355_v9 }
  0x22   :  { %317 = vmatmul.mubr.bf16.vlgmr.msra.gmra.mrb[0].mxu0 %v358_v10  ;;  %325 = vmatmul.mubr.bf16.vlgmr.msra.gmra.mrb[0].mxu1 %v359_v11 }
  0x23   :  { %320 = vmatprep.mubr.bf16.mxu0 %v360_v12  ;;  %328 = vmatprep.mubr.bf16.mxu1 %v361_v13 }
  0x2a   :  { %321 = vmatmul.mubr.bf16.gmra.mrb[4].mxu0 %v362_v14  ;;  %329 = vmatmul.mubr.bf16.gmra.mrb[4].mxu1 %v363_v15 }
  0xf5   :  { %v318_v17 = vpop.f32.mrb[0].mxu0  ;;  %v326_v18 = vpop.f32.mrb[0].mxu1 }
  0xf6   :  { %v193_v19 = vadd.f32 %v318_v17, %v267_v16  ;;  %v225_v20 = vadd.f32 %v326_v18, %v267_v16  ;;  %v184_v21 = vpop.f32.mrb[1].mxu0  ;;  %v216_v22 = vpop.f32.mrb[1].mxu1 }
  0xf7   :  { %v185_v23 = vadd.f32 %v267_v16, %v184_v21  ;;  %v217_v24 = vadd.f32 %v267_v16, %v216_v22  ;;  %v319_v25 = vpop.f32.mrb[2].mxu0  ;;  %v327_v26 = vpop.f32.mrb[2].mxu1 }
  0xf8   :  { %249 = vst [vmem:[%s486_s3 + $0x10] sm:$0xff] %v193_v19  ;;  %257 = vst [vmem:[%s486_s3 + $0x50] sm:$0xff] %v225_v20  ;;  %v196_v27 = vadd.f32 %v319_v25, %v267_v16  ;;  %v228_v28 = vadd.f32 %v327_v26, %v267_v16  ;;  %v187_v29 = vpop.f32.mrb[3].mxu0  ;;  %v219_v30 = vpop.f32.mrb[3].mxu1 }
  0xf9   :  { %247 = vst [vmem:[%s486_s3] sm:$0xff] %v185_v23  ;;  %255 = vst [vmem:[%s486_s3 + $0x40] sm:$0xff] %v217_v24  ;;  %v188_v31 = vadd.f32 %v267_v16, %v187_v29  ;;  %v220_v32 = vadd.f32 %v267_v16, %v219_v30 }
  0xfa   :  { %250 = vst [vmem:[%s486_s3 + $0x18] sm:$0xff] %v196_v27  ;;  %258 = vst [vmem:[%s486_s3 + $0x58] sm:$0xff] %v228_v28 }
  0xfb   :  { %248 = vst [vmem:[%s486_s3 + $0x8] sm:$0xff] %v188_v31  ;;  %256 = vst [vmem:[%s486_s3 + $0x48] sm:$0xff] %v220_v32 }
  0xfd   :  { %v322_v33 = vpop.f32.mrb[4].mxu0  ;;  %v330_v34 = vpop.f32.mrb[4].mxu1 }
  0xfe   :  { %v209_v35 = vadd.f32 %v322_v33, %v267_v16  ;;  %v241_v36 = vadd.f32 %v330_v34, %v267_v16  ;;  %v200_v37 = vpop.f32.mrb[5].mxu0  ;;  %v232_v38 = vpop.f32.mrb[5].mxu1 }
  0xff   :  { %v201_v39 = vadd.f32 %v267_v16, %v200_v37  ;;  %v233_v40 = vadd.f32 %v267_v16, %v232_v38  ;;  %v323_v41 = vpop.f32.mrb[6].mxu0  ;;  %v331_v42 = vpop.f32.mrb[6].mxu1 }
 0x100   :  { %253 = vst [vmem:[%s486_s3 + $0x30] sm:$0xff] %v209_v35  ;;  %261 = vst [vmem:[%s486_s3 + $0x70] sm:$0xff] %v241_v36  ;;  %v212_v43 = vadd.f32 %v323_v41, %v267_v16  ;;  %v244_v44 = vadd.f32 %v331_v42, %v267_v16  ;;  %v203_v45 = vpop.f32.mrb[7].mxu0  ;;  %v235_v46 = vpop.f32.mrb[7].mxu1 }
 0x101   :  { %251 = vst [vmem:[%s486_s3 + $0x20] sm:$0xff] %v201_v39  ;;  %259 = vst [vmem:[%s486_s3 + $0x60] sm:$0xff] %v233_v40  ;;  %v204_v47 = vadd.f32 %v267_v16, %v203_v45  ;;  %v236_v48 = vadd.f32 %v267_v16, %v235_v46 }
 0x102   :  { %254 = vst [vmem:[%s486_s3 + $0x38] sm:$0xff] %v212_v43  ;;  %262 = vst [vmem:[%s486_s3 + $0x78] sm:$0xff] %v244_v44 }
 0x103   :  { %252 = vst [vmem:[%s486_s3 + $0x28] sm:$0xff] %v204_v47  ;;  %260 = vst [vmem:[%s486_s3 + $0x68] sm:$0xff] %v236_v48 }

</bundles_post_ra>
